<compile_context>
chip_gen: v6e
topology: v6e:2x2x1
jax: 0.10.0
libtpu: 0.0.40
codegen_flags: <defaults>
</compile_context>

<pallas_src>
import math

import jax
import jax.numpy as jnp
from jax.experimental import pallas as pl
from jax.experimental.pallas import tpu as pltpu

DROPOUT_P = 0.8
KEEP_PROB = 1.0 - DROPOUT_P
KEEP_SCALE = 1.0 / KEEP_PROB
_KEEP_THRESHOLD_U32 = int(round(KEEP_PROB * 2.0 ** 32))   # bits < thr  <=>  keep
BN_EPS = 1e-5
L2_EPS = 1e-12


def _encoder_kernel(x_ref, bits_ref,
                    w1_ref, b1_ref, g1_ref, be1_ref,
                    w2_ref, b2_ref, g2_ref, be2_ref,
                    w3_ref, b3_ref,
                    o_ref):
    # ---- Dropout (training-mode semantics): integer-threshold compare ----
    # TODO(synk): dropout distribution matches torch, but the RNG bit-stream is
    # jax.random (threefry), not torch's generator -- masks are not bit-identical.
    keep = bits_ref[...] < jnp.uint32(_KEEP_THRESHOLD_U32)
    x = jnp.where(keep, x_ref[...] * KEEP_SCALE, 0.0)

    def linear(h, w_ref, b_ref):
        # bf16 operands on the MXU, f32 accumulation; bias broadcast over batch.
        return jnp.dot(h.astype(jnp.bfloat16), w_ref[...],
                       preferred_element_type=jnp.float32) + b_ref[...]

    def bn_relu(h, g_ref, be_ref):
        # BatchNorm1d training mode (biased variance), folded into scale/shift:
        #   y = h * scale + shift,  scale = g * rsqrt(var + eps),
        #                           shift = beta - mean * scale
        mean = jnp.mean(h, axis=0, keepdims=True)
        mean_sq = jnp.mean(h * h, axis=0, keepdims=True)     # one pass over h
        var = mean_sq - mean * mean
        scale = g_ref[...] * jax.lax.rsqrt(var + BN_EPS)      # EUP rsqrt
        shift = be_ref[...] - mean * scale
        return jnp.maximum(h * scale + shift, 0.0)

    h = bn_relu(linear(x, w1_ref, b1_ref), g1_ref, be1_ref)
    h = bn_relu(linear(h, w2_ref, b2_ref), g2_ref, be2_ref)
    z = linear(h, w3_ref, b3_ref)                             # last Linear: no BN/ReLU

    # ---- F.normalize(dim=1): z / max(||z||, eps) == z * rsqrt(max(sumsq, eps^2)) ----
    sumsq = jnp.sum(z * z, axis=1, keepdims=True)
    o_ref[...] = z * jax.lax.rsqrt(jnp.maximum(sumsq, L2_EPS * L2_EPS))
    # TODO(synk): for production sizes with d_out < 128, emit a lane-dense
    # (128-padded) output slab to avoid masked partial stores.


def contrastive_representation_forward(x, params, dropout_key):
    """x: [B, dims[0]] float32. Returns L2-normalized latent [B, dims[-1]] float32."""
    B, d_in = x.shape
    d1 = params["w1"].shape[1]
    d2 = params["w2"].shape[1]
    d_out = params["w3"].shape[1]

    # Dropout bits from the JAX PRNG (deterministic given the key; portable).
    bits = jax.random.bits(dropout_key, (B, d_in), dtype=jnp.uint32)

    # Pre-cast matmul weights to bf16 (MXU-native); biases / BN params stay f32.
    args = (x, bits,
            params["w1"].astype(jnp.bfloat16), params["b1"],
            params["g1"], params["be1"],
            params["w2"].astype(jnp.bfloat16), params["b2"],
            params["g2"], params["be2"],
            params["w3"].astype(jnp.bfloat16), params["b3"])

    vmem = pl.BlockSpec(memory_space=pltpu.MemorySpace.VMEM)

    flops = 2 * B * (d_in * d1 + d1 * d2 + d2 * d_out)
    transcendentals = d1 + d2 + B                             # rsqrt per BN feature + per row
    bytes_accessed = 4 * (x.size + bits.size + B * d_out) + sum(
        int(a.size) * a.dtype.itemsize for a in args[2:])
    cost = pl.CostEstimate(flops=flops,
                           transcendentals=transcendentals,
                           bytes_accessed=int(bytes_accessed))

    return pl.pallas_call(
        _encoder_kernel,
        out_shape=jax.ShapeDtypeStruct((B, d_out), jnp.float32),
        in_specs=[vmem] * len(args),
        out_specs=vmem,
        cost_estimate=cost,
    )(*args)


def init_params(key, dims):
    """Matches the module __init__: Linear weights xavier_uniform, biases
       U(-1/sqrt(fan_in), 1/sqrt(fan_in)); BatchNorm gamma=1, beta=0.
       Weights stored pre-transposed as [in, out] so the kernel does h @ W."""
    assert len(dims) == 4, "this synthetic kernel is specialized to 3 linear layers"
    params = {}
    keys = jax.random.split(key, 6)
    for li in range(3):
        fan_in, fan_out = dims[li], dims[li + 1]
        wb = math.sqrt(6.0 / (fan_in + fan_out))
        params[f"w{li+1}"] = jax.random.uniform(
            keys[2 * li], (fan_in, fan_out), jnp.float32, minval=-wb, maxval=wb)
        bb = 1.0 / math.sqrt(fan_in)
        params[f"b{li+1}"] = jax.random.uniform(
            keys[2 * li + 1], (1, fan_out), jnp.float32, minval=-bb, maxval=bb)
        if li < 2:  # BN only on the first two layers (enc[:-2] strips the last BN+ReLU)
            params[f"g{li+1}"] = jnp.ones((1, fan_out), jnp.float32)
            params[f"be{li+1}"] = jnp.zeros((1, fan_out), jnp.float32)
    return params


if __name__ == "__main__":
    dims = [128, 64, 32, 16]   # dims[0] = input feature dim, dims[-1] = latent dim
    B = 8

    key = jax.random.PRNGKey(0)
    kx, kp, kd = jax.random.split(key, 3)
    params = init_params(kp, dims)
    x = jax.random.normal(kx, (B, dims[0]), dtype=jnp.float32)

    out = contrastive_representation_forward(x, params, kd)
    out = jax.block_until_ready(out)

    assert out.shape == (B, dims[-1]) and out.dtype == jnp.float32
    # rows should be unit-norm (up to fp error)
    row_norms = jnp.sqrt(jnp.sum(out * out, axis=1))
    assert bool(jnp.all(jnp.abs(row_norms - 1.0) < 1e-3))
    print("KERNEL_OK")
</pallas_src>

<mosaic_0001>
module attributes {stable_mosaic.version = 11 : i64} {
  func.func @_encoder_kernel(%arg0: memref<8x128xf32, #tpu.memory_space<vmem>>, %arg1: memref<8x128xi32, #tpu.memory_space<vmem>>, %arg2: memref<128x64xbf16, #tpu.memory_space<vmem>>, %arg3: memref<1x64xf32, #tpu.memory_space<vmem>>, %arg4: memref<1x64xf32, #tpu.memory_space<vmem>>, %arg5: memref<1x64xf32, #tpu.memory_space<vmem>>, %arg6: memref<64x32xbf16, #tpu.memory_space<vmem>>, %arg7: memref<1x32xf32, #tpu.memory_space<vmem>>, %arg8: memref<1x32xf32, #tpu.memory_space<vmem>>, %arg9: memref<1x32xf32, #tpu.memory_space<vmem>>, %arg10: memref<32x16xbf16, #tpu.memory_space<vmem>>, %arg11: memref<1x16xf32, #tpu.memory_space<vmem>>, %arg12: memref<8x16xf32, #tpu.memory_space<vmem>>) attributes {dimension_semantics = [], scalar_prefetch = 0 : i64, scratch_operands = 0 : i64, tpu.core_type = #tpu.core_type<tc>} {
    %c0 = arith.constant 0 : index
    %c0_0 = arith.constant 0 : index
    %0 = vector.load %arg1[%c0, %c0_0] : memref<8x128xi32, #tpu.memory_space<vmem>>, vector<8x128xi32>
    %c858993459_i32 = arith.constant 858993459 : i32
    %1 = vector.broadcast %c858993459_i32 : i32 to vector<8x128xi32>
    %2 = arith.cmpi ult, %0, %1 : vector<8x128xi32>
    %c0_1 = arith.constant 0 : index
    %c0_2 = arith.constant 0 : index
    %3 = vector.load %arg0[%c0_1, %c0_2] : memref<8x128xf32, #tpu.memory_space<vmem>>, vector<8x128xf32>
    %cst = arith.constant 5.000000e+00 : f32
    %4 = vector.broadcast %cst : f32 to vector<8x128xf32>
    %5 = arith.mulf %3, %4 : vector<8x128xf32>
    %cst_3 = arith.constant 0.000000e+00 : f32
    %6 = vector.broadcast %cst_3 : f32 to vector<8x128xf32>
    %7 = arith.select %2, %5, %6 : vector<8x128xi1>, vector<8x128xf32>
    %8 = arith.truncf %7 : vector<8x128xf32> to vector<8x128xbf16>
    %c0_4 = arith.constant 0 : index
    %c0_5 = arith.constant 0 : index
    %9 = vector.load %arg2[%c0_4, %c0_5] : memref<128x64xbf16, #tpu.memory_space<vmem>>, vector<128x64xbf16>
    %cst_6 = arith.constant dense<0.000000e+00> : vector<8x64xf32>
    %10 = tpu.matmul %8, %9, %cst_6 {dimension_numbers = #tpu.dot_dimension_numbers<[1], [0], [0], [1], [0, 0, 1, 1], [], []>} : vector<8x128xbf16>, vector<128x64xbf16>, vector<8x64xf32> -> vector<8x64xf32>
    %c0_7 = arith.constant 0 : index
    %c0_8 = arith.constant 0 : index
    %11 = vector.load %arg3[%c0_7, %c0_8] : memref<1x64xf32, #tpu.memory_space<vmem>>, vector<1x64xf32>
    %12 = vector.broadcast %11 : vector<1x64xf32> to vector<8x64xf32>
    %13 = arith.addf %10, %12 : vector<8x64xf32>
    %cst_9 = arith.constant dense<0.000000e+00> : vector<64xf32>
    %14 = vector.multi_reduction <add>, %13, %cst_9 [0] : vector<8x64xf32> to vector<64xf32>
    %15 = vector.shape_cast %14 : vector<64xf32> to vector<1x64xf32>
    %cst_10 = arith.constant 8.000000e+00 : f32
    %16 = vector.broadcast %cst_10 : f32 to vector<1x64xf32>
    %17 = arith.divf %15, %16 : vector<1x64xf32>
    %18 = arith.mulf %13, %13 : vector<8x64xf32>
    %cst_11 = arith.constant dense<0.000000e+00> : vector<64xf32>
    %19 = vector.multi_reduction <add>, %18, %cst_11 [0] : vector<8x64xf32> to vector<64xf32>
    %20 = vector.shape_cast %19 : vector<64xf32> to vector<1x64xf32>
    %cst_12 = arith.constant 8.000000e+00 : f32
    %21 = vector.broadcast %cst_12 : f32 to vector<1x64xf32>
    %22 = arith.divf %20, %21 : vector<1x64xf32>
    %23 = arith.mulf %17, %17 : vector<1x64xf32>
    %24 = arith.subf %22, %23 : vector<1x64xf32>
    %c0_13 = arith.constant 0 : index
    %c0_14 = arith.constant 0 : index
    %25 = vector.load %arg4[%c0_13, %c0_14] : memref<1x64xf32, #tpu.memory_space<vmem>>, vector<1x64xf32>
    %cst_15 = arith.constant 9.99999974E-6 : f32
    %26 = vector.broadcast %cst_15 : f32 to vector<1x64xf32>
    %27 = arith.addf %24, %26 : vector<1x64xf32>
    %28 = math.rsqrt %27 : vector<1x64xf32>
    %29 = arith.mulf %25, %28 : vector<1x64xf32>
    %c0_16 = arith.constant 0 : index
    %c0_17 = arith.constant 0 : index
    %30 = vector.load %arg5[%c0_16, %c0_17] : memref<1x64xf32, #tpu.memory_space<vmem>>, vector<1x64xf32>
    %31 = arith.mulf %17, %29 : vector<1x64xf32>
    %32 = arith.subf %30, %31 : vector<1x64xf32>
    %33 = vector.broadcast %29 : vector<1x64xf32> to vector<8x64xf32>
    %34 = arith.mulf %13, %33 : vector<8x64xf32>
    %35 = vector.broadcast %32 : vector<1x64xf32> to vector<8x64xf32>
    %36 = arith.addf %34, %35 : vector<8x64xf32>
    %cst_18 = arith.constant 0.000000e+00 : f32
    %37 = vector.broadcast %cst_18 : f32 to vector<8x64xf32>
    %38 = arith.maximumf %36, %37 : vector<8x64xf32>
    %39 = arith.truncf %38 : vector<8x64xf32> to vector<8x64xbf16>
    %c0_19 = arith.constant 0 : index
    %c0_20 = arith.constant 0 : index
    %40 = vector.load %arg6[%c0_19, %c0_20] : memref<64x32xbf16, #tpu.memory_space<vmem>>, vector<64x32xbf16>
    %cst_21 = arith.constant dense<0.000000e+00> : vector<8x32xf32>
    %41 = tpu.matmul %39, %40, %cst_21 {dimension_numbers = #tpu.dot_dimension_numbers<[1], [0], [0], [1], [0, 0, 1, 1], [], []>} : vector<8x64xbf16>, vector<64x32xbf16>, vector<8x32xf32> -> vector<8x32xf32>
    %c0_22 = arith.constant 0 : index
    %c0_23 = arith.constant 0 : index
    %42 = vector.load %arg7[%c0_22, %c0_23] : memref<1x32xf32, #tpu.memory_space<vmem>>, vector<1x32xf32>
    %43 = vector.broadcast %42 : vector<1x32xf32> to vector<8x32xf32>
    %44 = arith.addf %41, %43 : vector<8x32xf32>
    %cst_24 = arith.constant dense<0.000000e+00> : vector<32xf32>
    %45 = vector.multi_reduction <add>, %44, %cst_24 [0] : vector<8x32xf32> to vector<32xf32>
    %46 = vector.shape_cast %45 : vector<32xf32> to vector<1x32xf32>
    %cst_25 = arith.constant 8.000000e+00 : f32
    %47 = vector.broadcast %cst_25 : f32 to vector<1x32xf32>
    %48 = arith.divf %46, %47 : vector<1x32xf32>
    %49 = arith.mulf %44, %44 : vector<8x32xf32>
    %cst_26 = arith.constant dense<0.000000e+00> : vector<32xf32>
    %50 = vector.multi_reduction <add>, %49, %cst_26 [0] : vector<8x32xf32> to vector<32xf32>
    %51 = vector.shape_cast %50 : vector<32xf32> to vector<1x32xf32>
    %cst_27 = arith.constant 8.000000e+00 : f32
    %52 = vector.broadcast %cst_27 : f32 to vector<1x32xf32>
    %53 = arith.divf %51, %52 : vector<1x32xf32>
    %54 = arith.mulf %48, %48 : vector<1x32xf32>
    %55 = arith.subf %53, %54 : vector<1x32xf32>
    %c0_28 = arith.constant 0 : index
    %c0_29 = arith.constant 0 : index
    %56 = vector.load %arg8[%c0_28, %c0_29] : memref<1x32xf32, #tpu.memory_space<vmem>>, vector<1x32xf32>
    %cst_30 = arith.constant 9.99999974E-6 : f32
    %57 = vector.broadcast %cst_30 : f32 to vector<1x32xf32>
    %58 = arith.addf %55, %57 : vector<1x32xf32>
    %59 = math.rsqrt %58 : vector<1x32xf32>
    %60 = arith.mulf %56, %59 : vector<1x32xf32>
    %c0_31 = arith.constant 0 : index
    %c0_32 = arith.constant 0 : index
    %61 = vector.load %arg9[%c0_31, %c0_32] : memref<1x32xf32, #tpu.memory_space<vmem>>, vector<1x32xf32>
    %62 = arith.mulf %48, %60 : vector<1x32xf32>
    %63 = arith.subf %61, %62 : vector<1x32xf32>
    %64 = vector.broadcast %60 : vector<1x32xf32> to vector<8x32xf32>
    %65 = arith.mulf %44, %64 : vector<8x32xf32>
    %66 = vector.broadcast %63 : vector<1x32xf32> to vector<8x32xf32>
    %67 = arith.addf %65, %66 : vector<8x32xf32>
    %cst_33 = arith.constant 0.000000e+00 : f32
    %68 = vector.broadcast %cst_33 : f32 to vector<8x32xf32>
    %69 = arith.maximumf %67, %68 : vector<8x32xf32>
    %70 = arith.truncf %69 : vector<8x32xf32> to vector<8x32xbf16>
    %c0_34 = arith.constant 0 : index
    %c0_35 = arith.constant 0 : index
    %71 = vector.load %arg10[%c0_34, %c0_35] : memref<32x16xbf16, #tpu.memory_space<vmem>>, vector<32x16xbf16>
    %cst_36 = arith.constant dense<0.000000e+00> : vector<8x16xf32>
    %72 = tpu.matmul %70, %71, %cst_36 {dimension_numbers = #tpu.dot_dimension_numbers<[1], [0], [0], [1], [0, 0, 1, 1], [], []>} : vector<8x32xbf16>, vector<32x16xbf16>, vector<8x16xf32> -> vector<8x16xf32>
    %c0_37 = arith.constant 0 : index
    %c0_38 = arith.constant 0 : index
    %73 = vector.load %arg11[%c0_37, %c0_38] : memref<1x16xf32, #tpu.memory_space<vmem>>, vector<1x16xf32>
    %74 = vector.broadcast %73 : vector<1x16xf32> to vector<8x16xf32>
    %75 = arith.addf %72, %74 : vector<8x16xf32>
    %76 = arith.mulf %75, %75 : vector<8x16xf32>
    %cst_39 = arith.constant dense<0.000000e+00> : vector<8xf32>
    %77 = vector.multi_reduction <add>, %76, %cst_39 [1] : vector<8x16xf32> to vector<8xf32>
    %78 = vector.shape_cast %77 : vector<8xf32> to vector<8x1xf32>
    %cst_40 = arith.constant 1.000000e-24 : f32
    %79 = vector.broadcast %cst_40 : f32 to vector<8x1xf32>
    %80 = arith.maximumf %78, %79 : vector<8x1xf32>
    %81 = math.rsqrt %80 : vector<8x1xf32>
    %82 = vector.broadcast %81 : vector<8x1xf32> to vector<8x16xf32>
    %83 = arith.mulf %75, %82 : vector<8x16xf32>
    %c0_41 = arith.constant 0 : index
    %c0_42 = arith.constant 0 : index
    %84 = vector.load %arg12[%c0_41, %c0_42] : memref<8x16xf32, #tpu.memory_space<vmem>>, vector<8x16xf32>
    tpu.vector_store %arg12[%c0_41, %c0_42], %83 {strides = array<i32>} : memref<8x16xf32, #tpu.memory_space<vmem>>, vector<8x16xf32>,
    return
  }
}

</mosaic_0001>

<bundles_post_ra>
// kernel: tpu_custom_call.1
= control target key start
LH: loop header
LB: loop body
LE: loop exit
PB: predicated region body
PF: predicated region fallthrough
CT: control target
= control target key end

     0   :  { %v542_v1 = vmov 0.0   ;;  %vm543_vm0 = vmmov 0   ;;  %s708_s0 = inlined_call_operand.vmem [shape: f32[8,128], index: 0, kind: input, shape index: {}]   ;;  %s709_s1 = inlined_call_operand.vmem [shape: u32[8,128], index: 1, kind: input, shape index: {}]   ;;  %s710_s2 = inlined_call_operand.vmem [shape: bf16[128,64], index: 2, kind: input, shape index: {}]   ;;  %s711_s3 = inlined_call_operand.vmem [shape: f32[1,64], index: 3, kind: input, shape index: {}]   ;;  %s712_s4 = inlined_call_operand.vmem [shape: f32[1,64], index: 4, kind: input, shape index: {}]   ;;  %s713_s5 = inlined_call_operand.vmem [shape: f32[1,64], index: 5, kind: input, shape index: {}]   ;;  %s714_s6 = inlined_call_operand.vmem [shape: bf16[64,32], index: 6, kind: input, shape index: {}]   ;;  %s715_s7 = inlined_call_operand.vmem [shape: f32[1,32], index: 7, kind: input, shape index: {}]   ;;  %s716_s8 = inlined_call_operand.vmem [shape: f32[1,32], index: 8, kind: input, shape index: {}]   ;;  %s717_s9 = inlined_call_operand.vmem [shape: f32[1,32], index: 9, kind: input, shape index: {}]   ;;  %s718_s10 = inlined_call_operand.vmem [shape: bf16[32,16], index: 10, kind: input, shape index: {}]   ;;  %s719_s11 = inlined_call_operand.vmem [shape: f32[1,16], index: 11, kind: input, shape index: {}]   ;;  %s720_s12 = inlined_call_operand.hbm [shape: f32[8,16], index: 12, kind: output, shape index: {}]  }
   0x1   :  { %v500_v0 = vld [vmem:[%s710_s2 + $0x38] sm:$0xff]   ;;  %457 = vmatprep.subr.bf16.mxu0 %v542_v1  ;;  %477 = vmatprep.subr.bf16.mxu1 %v542_v1  ;;  %v501_v2 = vld [vmem:[%s710_s2 + $0x30] sm:$0xff]   ;;  %v502_v3 = vld [vmem:[%s710_s2 + $0x28] sm:$0xff]  }
   0x2   :  { %458 = vmatpush3.bf16.msra.mxu0 %v500_v0  ;;  %473 = vmatprep.mubr.msk.bf16.mxu0 %vm543_vm0, %v542_v1  ;;  %v503_v4 = vld [vmem:[%s710_s2 + $0x20] sm:$0xff]   ;;  %v504_v5 = vld [vmem:[%s710_s2 + $0x18] sm:$0xff]  }
   0x3   :  { %459 = vmatprep.subr.bf16.mxu0 %v542_v1  ;;  %485 = vmatprep.mubr.msk.bf16.mxu1 %vm543_vm0, %v542_v1 }
   0x6   :  { %460 = vmatpush3.bf16.msra.mxu0 %v501_v2 }
   0x7   :  { %461 = vmatprep.subr.bf16.mxu0 %v542_v1 }
   0xa   :  { %462 = vmatpush3.bf16.msra.mxu0 %v502_v3 }
   0xb   :  { %463 = vmatprep.subr.bf16.mxu0 %v542_v1 }
   0xe   :  { %464 = vmatpush3.bf16.msra.mxu0 %v503_v4 }
   0xf   :  { %17 = vsyncpa [#allocation3], 0  ;;  %465 = vmatprep.subr.bf16.mxu0 %v542_v1  ;;  %v505_v6 = vld [vmem:[%s710_s2 + $0x10] sm:$0xff]   ;;  %v506_v7 = vld [vmem:[%s710_s2 + $0x8] sm:$0xff]   ;;  %vm160_vm3 = vcmask 523264   ;;  %v189_v43 = vlaneseq  ;;  %vm286_vm4 = vcmask 261120  }
  0x10   :  { %v45_v8 = vld [vmem:[%s708_s0] sm:$0xff]  ;;  %v508_v13 = vld [vmem:[%s714_s6 + $0x18] sm:$0xff]   ;;  %v509_v14 = vld [vmem:[%s714_s6 + $0x10] sm:$0xff]   ;;  %vm396_vm5 = vcmask 130048  }
  0x11   :  { %v43_v9 = vld [vmem:[%s709_s1] sm:$0xff]  ;;  %v46_v10 = vmul.f32 5.0, %v45_v8  ;;  %478 = vmatpush3.bf16.msra.mxu1 %v508_v13  ;;  %v510_v15 = vld [vmem:[%s714_s6 + $0x8] sm:$0xff]   ;;  %v190_v44 = vshrl.u32 %v189_v43, 7 }
  0x12   :  { %466 = vmatpush3.bf16.msra.mxu0 %v504_v5  ;;  %v507_v11 = vld [vmem:[%s710_s2] sm:$0xff]   ;;  %vm44_vm1 = vcmp.lt.u32.totalorder %v43_v9, 858993459  ;;  %479 = vmatprep.subr.bf16.mxu1 %v542_v1  ;;  %v512_v58 = vld [vmem:[%s718_s10 + $0x8] sm:$0xff]  }
  0x13   :  { %467 = vmatprep.subr.bf16.mxu0 %v542_v1  ;;  %v428_v12 = vpack.c.bf16 %v46_v10, %v46_v10  ;;  %vm427_vm2 = vmpackc.low %vm44_vm1, %vm44_vm1  ;;  %v511_v16 = vld [vmem:[%s714_s6] sm:$0xff]   ;;  %v191_v46 = vsub.s32 0, %v190_v44 }
  0x14   :  { %v418_v17 = vld [vmem:[%s711_s3] ss:$0 sm:$0xff] }
  0x15   :  { %480 = vmatpush3.bf16.msra.mxu1 %v509_v14  ;;  %v181_v45 = vld [vmem:[%s712_s4] sm:$0x1] }
  0x16   :  { %468 = vmatpush3.bf16.msra.mxu0 %v505_v6  ;;  %481 = vmatprep.subr.bf16.mxu1 %v542_v1  ;;  %v185_v49 = vld [vmem:[%s713_s5] sm:$0x1] }
  0x17   :  { %469 = vmatprep.subr.bf16.mxu0 %v542_v1  ;;  %v513_v59 = vld [vmem:[%s718_s10] sm:$0xff]  }
  0x18   :  { %v430_v60 = vld [vmem:[%s715_s7] ss:$0 sm:$0xff] }
  0x19   :  { %482 = vmatpush3.bf16.msra.mxu1 %v510_v15 }
  0x1a   :  { %470 = vmatpush3.bf16.msra.mxu0 %v506_v7  ;;  %483 = vmatprep.subr.bf16.mxu1 %v542_v1 }
  0x1b   :  { %471 = vmatprep.subr.bf16.mxu0 %v542_v1 }
  0x1d   :  { %484 = vmatpush3.bf16.msra.mxu1 %v511_v16 }
  0x1e   :  { %472 = vmatpush3.bf16.msra.mxu0 %v507_v11  ;;  %489 = vmatprep.subr.bf16.mxu1 %v542_v1 }
  0x21   :  { %474 = vmatmul.mubr.msk.bf16.vlgmr.msra.gmra.mxu0 %vm427_vm2, %v428_v12 }
  0xe1   :  { %v154_v18 = vpop.f32.mrf.mxu0 }
  0xe2   :  { %v155_v19 = vadd.f32 %v418_v17, %v154_v18 }
  0xe3   :  { %v475_v20 = vpop.f32.mrf.mxu0 }
  0xe4   :  { %v170_v21 = vmul.f32 %v155_v19, %v155_v19  ;;  %v161_v22 = vsel %vm160_vm3, %v155_v19, 0.0 }
  0xe5   :  { %v157_v23 = vpop.f32.mrf.mxu0  ;;  %v162_v24 = vrot.slane %v161_v22, 4 }
  0xe6   :  { %v171_v25 = vsel %vm160_vm3, %v170_v21, 0.0 }
  0xe7   :  { %v476_v26 = vpop.f32.mrf.mxu0  ;;  %v163_v27 = vadd.f32 %v162_v24, %v161_v22  ;;  %v172_v28 = vrot.slane %v171_v25, 4  ;;  %v306_v22 = vld [vmem:[%s716_s8] sm:$0x1]  ;;  %s544_s8 = smov [#allocation2]  }
  0xe9   :  { %v164_v29 = vrot.slane %v163_v27, 2  ;;  %v173_v30 = vadd.f32 %v172_v28, %v171_v25  ;;  %v310_v25 = vld [vmem:[%s717_s9] sm:$0x1]  ;;  %s410_s9 = sshll.u32 %s544_s8, 4  ;;  %s411_s9 = int_to_ptr.vmem [resolvable:$true] %s410_s9 }
  0xea   :  { %s520_s22 = scalar_lea.vmem %s411_s9, 128  ;;  %p525_p1 = scmp.lt.s32.totalorder %s411_s9, %s411_s9 }
  0xeb   :  { %v165_v31 = vadd.f32 %v164_v29, %v163_v27  ;;  %v174_v32 = vrot.slane %v173_v30, 2  ;;  %p521_p0 = scmp.ne.s32.totalorder %s411_s9, %s520_s22  ;;  %p526_p2 = scmp.lt.s32.totalorder %s520_s22, %s520_s22 }
  0xed   :  { %v166_v33 = vrot.slane %v165_v31, 1  ;;  %v175_v34 = vadd.f32 %v174_v32, %v173_v30  ;;  %p527_p3 = por %p526_p2, %p525_p1 }
  0xef   :  { %v167_v35 = vadd.f32 %v166_v33, %v165_v31  ;;  %v176_v36 = vrot.slane %v175_v34, 1  ;;  %p528_p4 = pnand %p527_p3, %p521_p0 }
  0xf1   :  { %v169_v37 = vmul.f32 0.125, %v167_v35  ;;  %v177_v38 = vadd.f32 %v176_v36, %v175_v34  ;;  %v436_v34 = vld [vmem:[%s719_s11] ss:$0 sm:$0xff] }
  0xf3   :  { %v178_v39 = vmul.f32 0.125, %v177_v38  ;;  %v179_v40 = vmul.f32 %v169_v37, %v169_v37 }
  0xf5   :  { %v180_v41 = vsub.f32 %v178_v39, %v179_v40 }
  0xf7   :  { %v182_v42 = vadd.f32 1e-05, %v180_v41 }
  0xf9   :  { %514 = vrsqrt.f32 %v182_v42 }
 0x106   :  { %v515_v47 = vpop.eup %514 }
 0x107   :  { %v184_v48 = vmul.f32 %v515_v47, %v181_v45 }
 0x109   :  { %v186_v50 = vmul.f32 %v184_v48, %v169_v37  ;;  %v192_v51 = vrot.slane %v184_v48, %v191_v46 }
 0x10b   :  { %v187_v52 = vsub.f32 %v185_v49, %v186_v50  ;;  %v194_v53 = vmul.f32 %v192_v51, %v155_v19 }
 0x10d   :  { %v199_v54 = vrot.slane %v187_v52, %v191_v46 }
 0x10f   :  { %v201_v55 = vadd.f32 %v199_v54, %v194_v53 }
 0x111   :  { %v202_v56 = vmax.f32 %v201_v55, 0.0 }
 0x113   :  { %v203_v57 = vpack.c.bf16 %v202_v56, %v202_v56 }
 0x115   :  { %486 = vmatmul.mubr.msk.bf16.vlgmr.msra.gmra.mxu1 %vm160_vm3, %v203_v57 }
 0x116   :  { %493 = vmatprep.mubr.msk.bf16.mxu1 %vm543_vm0, %v542_v1  ;;  %490 = vmatpush3.bf16.msra.mxu1 %v512_v58 }
 0x117   :  { %491 = vmatprep.subr.bf16.mxu1 %v542_v1 }
 0x11a   :  { %492 = vmatpush3.bf16.msra.mxu1 %v513_v59 }
 0x1d5   :  { %v280_v61 = vpop.f32.mrf.mxu1 }
 0x1d6   :  { %v281_v62 = vadd.f32 %v430_v60, %v280_v61 }
 0x1d7   :  { %v487_v63 = vpop.f32.mrf.mxu1 }
 0x1d8   :  { %v287_v0 = vsel %vm286_vm4, %v281_v62, 0.0  ;;  %v295_v2 = vmul.f32 %v281_v62, %v281_v62 }
 0x1d9   :  { %v288_v3 = vrot.slane %v287_v0, 4  ;;  %v283_v4 = vpop.f32.mrf.mxu1 }
 0x1da   :  { %v296_v1 = vsel %vm286_vm4, %v295_v2, 0.0 }
 0x1db   :  { %v289_v5 = vadd.f32 %v288_v3, %v287_v0  ;;  %v297_v6 = vrot.slane %v296_v1, 4  ;;  %v488_v7 = vpop.f32.mrf.mxu1 }
 0x1dd   :  { %v290_v8 = vrot.slane %v289_v5, 2  ;;  %v298_v9 = vadd.f32 %v297_v6, %v296_v1 }
 0x1df   :  { %v291_v10 = vadd.f32 %v290_v8, %v289_v5  ;;  %v299_v11 = vrot.slane %v298_v9, 2 }
 0x1e1   :  { %v292_v12 = vrot.slane %v291_v10, 1  ;;  %v300_v13 = vadd.f32 %v299_v11, %v298_v9 }
 0x1e3   :  { %v293_v14 = vadd.f32 %v292_v12, %v291_v10  ;;  %v301_v15 = vrot.slane %v300_v13, 1 }
 0x1e5   :  { %v294_v16 = vmul.f32 0.125, %v293_v14  ;;  %v302_v17 = vadd.f32 %v301_v15, %v300_v13 }
 0x1e7   :  { %v303_v18 = vmul.f32 0.125, %v302_v17  ;;  %v304_v19 = vmul.f32 %v294_v16, %v294_v16 }
 0x1e9   :  { %v305_v20 = vsub.f32 %v303_v18, %v304_v19 }
 0x1eb   :  { %v307_v21 = vadd.f32 1e-05, %v305_v20 }
 0x1ed   :  { %516 = vrsqrt.f32 %v307_v21 }
 0x1fa   :  { %v517_v23 = vpop.eup %516 }
 0x1fb   :  { %v309_v24 = vmul.f32 %v517_v23, %v306_v22 }
 0x1fd   :  { %v311_v26 = vmul.f32 %v309_v24, %v294_v16  ;;  %v317_v27 = vrot.slane %v309_v24, %v191_v46 }
 0x1ff   :  { %v312_v28 = vsub.f32 %v310_v25, %v311_v26  ;;  %v319_v29 = vmul.f32 %v317_v27, %v281_v62 }
 0x201   :  { %v324_v30 = vrot.slane %v312_v28, %v191_v46 }
 0x203   :  { %v326_v31 = vadd.f32 %v324_v30, %v319_v29 }
 0x205   :  { %v327_v32 = vmax.f32 %v326_v31, 0.0 }
 0x207   :  { %v328_v33 = vpack.c.bf16 %v327_v32, %v327_v32 }
 0x209   :  { %494 = vmatmul.mubr.msk.bf16.vlgmr.msra.gmra.mxu1 %vm286_vm4, %v328_v33 }
 0x2c9   :  { %v389_v35 = vpop.f32.mrf.mxu1 }
 0x2ca   :  { %v390_v36 = vadd.f32 %v436_v34, %v389_v35 }
 0x2cb   :  { %v495_v37 = vpop.f32.mrf.mxu1 }
 0x2cc   :  { %v395_v38 = vmul.f32 %v390_v36, %v390_v36 }
 0x2cd   :  { %v392_v39 = vpop.f32.mrf.mxu1 }
 0x2ce   :  { %v397_v40 = vsel %vm396_vm5, %v395_v38, 0.0 }
 0x2cf   :  { %v496_v41 = vpop.f32.mrf.mxu1  ;;  %398 = vadd.xlane.f32.xlu0 %v397_v40 }
 0x358   :  { %v399_v42 = vpop.xlane.xlu0 %398 }
 0x359   :  { %v400_v43 = vmax.f32 %v399_v42, 1e-24 }
 0x35b   :  { %518 = vrsqrt.f32 %v400_v43 }
 0x368   :  { %v519_v44 = vpop.eup %518 }
 0x369   :  { %v402_v45 = vmul.f32 %v519_v44, %v390_v36 }
 0x36b   :  { %403 = vst.msk [vmem:[#allocation2] sm:$0xff] %vm396_vm5, %v402_v45 }
 0x36c   :  { %531 = shalt.err (!%p528_p4)
}
 0x36d   :  { %413 = dma.vmem_to_hbm [thread:$0]  %s411_s9, 128, %s720_s12, [#allocation3]  }
 0x36e   :  { %540 = dma.done.wait [#allocation3], 128  }
 0x36f   :  { %541 = vsyncadd [#allocation3], 4294967168 }
 0x370   :  { %417 = vsyncpa [#allocation3], 1 }

</bundles_post_ra>
